<compile_context>
chip_gen: v7x
topology: tpu7x:2x2x1
jax: 0.10.0
libtpu: 0.0.40
codegen_flags: <defaults>
</compile_context>

<pallas_src>
import functools

import jax
import jax.numpy as jnp
from jax.experimental import pallas as pl
from jax.experimental.pallas import tpu as pltpu


def item_policy_kernel(ids_ref, x_ref, w_ref, emw_ref, o_ref):
    # ids: [Bt, 1] i32; x: [Bt, D_in] f32; w: [D_in, D_out] f32;
    # emw: [block_num, D_out] f32 (= block_em @ W + b); o: [Bt, D_out] f32
    bt = x_ref.shape[0]
    block_num = emw_ref.shape[0]

    # One-hot gather of the folded embedding rows, done as a matmul on the MXU.
    ids = ids_ref[...]                                              # [Bt, 1]
    col = jax.lax.broadcasted_iota(jnp.int32, (bt, block_num), 1)
    onehot = (ids == col).astype(jnp.float32)                       # [Bt, block_num]

    # z = (x + Embedding(ids)) @ W + b  ==  x @ W  +  onehot @ (block_em @ W + b)
    z = jnp.dot(x_ref[...], w_ref[...], preferred_element_type=jnp.float32)
    z = z + jnp.dot(onehot, emw_ref[...], preferred_element_type=jnp.float32)
    z = jnp.maximum(z, 0.0)                                         # ReLU

    # Numerically-stable softmax over the last dim (exact division: kernel is
    # HBM-bound so the divide is free, and rows sum to 1 within f32 rounding).
    m = jnp.max(z, axis=-1, keepdims=True)
    e = jnp.exp(z - m)
    denom = jnp.sum(e, axis=-1, keepdims=True)
    o_ref[...] = (e / denom).astype(o_ref.dtype)


def item_policy_forward(x, selected_block_ids, block_em, w, b, *, batch_tile=None):
    """x: [B, D_in] f32, selected_block_ids: [B] int,
       block_em: [block_num, D_in] f32,
       w: [D_in, D_out] f32 (PyTorch Linear weight transposed), b: [D_out] f32."""
    B, d_in = x.shape
    d_out = w.shape[1]
    block_num = block_em.shape[0]
    SUB = 8

    # Fold embedding + bias into output space once (tiny [block_num, d_out] matmul).
    em_w = block_em.astype(jnp.float32) @ w + b[None, :]            # [block_num, d_out]

    ids2d = selected_block_ids.astype(jnp.int32).reshape(B, 1)

    # Batch tile: large (amortizes ~0.35 us/step), multiple of 8; no wrapper-side
    # batch padding -- the ragged last block is handled by Pallas (tail rows are
    # never written back, and softmax is strictly row-wise so garbage tail rows
    # cannot affect valid rows).
    if batch_tile is None:
        batch_tile = 2048                       # sweepable; ~5-6 MiB VMEM -> fits v5e 16 MiB
        if B >= 4 * SUB:
            # keep >= ~4 grid steps so each TensorCore retains a pipelined loop
            batch_tile = min(batch_tile, max(SUB, (B // (4 * SUB)) * SUB))
    if B <= batch_tile:
        batch_tile = B                          # block == full array dim: always legal
    else:
        batch_tile = max(SUB, (batch_tile // SUB) * SUB)
    grid = (pl.cdiv(B, batch_tile),)

    # Advisory cost: this custom call is memory-bound.
    flops = 2 * B * d_out * (d_in + block_num) + 5 * B * d_out
    bytes_accessed = (B * (d_in + d_out + 1) * 4
                      + (d_in + block_num) * d_out * 4)
    cost = pl.CostEstimate(flops=flops,
                           transcendentals=B * d_out,
                           bytes_accessed=bytes_accessed)

    out = pl.pallas_call(
        item_policy_kernel,
        out_shape=jax.ShapeDtypeStruct((B, d_out), jnp.float32),
        grid_spec=pltpu.PrefetchScalarGridSpec(
            num_scalar_prefetch=0,
            grid=grid,
            in_specs=[
                pl.BlockSpec((batch_tile, 1), lambda i: (i, 0)),          # ids
                pl.BlockSpec((batch_tile, d_in), lambda i: (i, 0)),       # x
                pl.BlockSpec((d_in, d_out), lambda i: (0, 0)),            # W (VMEM-resident)
                pl.BlockSpec((block_num, d_out), lambda i: (0, 0)),       # em_w (VMEM-resident)
            ],
            out_specs=pl.BlockSpec((batch_tile, d_out), lambda i: (i, 0)),
        ),
        compiler_params=pltpu.CompilerParams(
            # TODO(synk): on v7x, confirm in the profile that both TensorCores run;
            # if not, switch to pltpu.CORE_PARALLEL / an explicit core split.
            dimension_semantics=("parallel",),
        ),
        cost_estimate=cost,
    )(ids2d, x, w, em_w)
    return out


def _reference(x, ids, block_em, w, b):
    h = x + block_em[ids]
    z = jnp.maximum(h @ w + b, 0.0)
    return jax.nn.softmax(z, axis=-1)


if __name__ == "__main__":
    # Small shapes consistent with the module.
    batch = 8
    input_dim = 32      # block_dim
    output_dim = 64
    block_num = 16

    key = jax.random.PRNGKey(0)
    k_x, k_ids, k_emb, k_w, k_b = jax.random.split(key, 5)

    x = jax.random.normal(k_x, (batch, input_dim), dtype=jnp.float32)
    selected_block_ids = jax.random.randint(k_ids, (batch,), 0, block_num, dtype=jnp.int32)

    # Deterministic synthetic params (mimicking nn.Embedding / nn.Linear shapes).
    block_em = jax.random.normal(k_emb, (block_num, input_dim), dtype=jnp.float32)
    bound = 1.0 / (input_dim ** 0.5)
    # PyTorch Linear weight is [out, in]; we store W = weight.T -> [in, out].
    w = jax.random.uniform(k_w, (input_dim, output_dim), dtype=jnp.float32,
                           minval=-bound, maxval=bound)
    b = jax.random.uniform(k_b, (output_dim,), dtype=jnp.float32,
                           minval=-bound, maxval=bound)

    out = item_policy_forward(x, selected_block_ids, block_em, w, b)
    jax.block_until_ready(out)

    ref = _reference(x, selected_block_ids, block_em, w, b)
    assert out.shape == (batch, output_dim)
    assert bool(jnp.all(jnp.abs(out - ref) < 5e-3))
    row_sums = jnp.sum(out, axis=-1)
    assert bool(jnp.all(jnp.abs(row_sums - 1.0) < 1e-4))   # exact reciprocal -> tight

    print("KERNEL_OK")
</pallas_src>

<mosaic_0001>
module attributes {stable_mosaic.version = 11 : i64} {
  func.func @item_policy_kernel(%arg0: i32, %arg1: memref<8x1xi32, #tpu.memory_space<vmem>>, %arg2: memref<8x32xf32, #tpu.memory_space<vmem>>, %arg3: memref<32x64xf32, #tpu.memory_space<vmem>>, %arg4: memref<16x64xf32, #tpu.memory_space<vmem>>, %arg5: memref<8x64xf32, #tpu.memory_space<vmem>>) attributes {dimension_semantics = [#tpu.dimension_semantics<parallel>], iteration_bounds = array<i64: 1>, scalar_prefetch = 0 : i64, scratch_operands = 0 : i64, tpu.core_type = #tpu.core_type<tc>, window_params = [{transform_indices = @transform_0, window_bounds = array<i64: 8, 1>}, {transform_indices = @transform_1, window_bounds = array<i64: 8, 32>}, {pipeline_mode = #tpu.pipeline_mode<synchronous>, transform_indices = @transform_2, window_bounds = array<i64: 32, 64>}, {pipeline_mode = #tpu.pipeline_mode<synchronous>, transform_indices = @transform_3, window_bounds = array<i64: 16, 64>}, {transform_indices = @transform_4, window_bounds = array<i64: 8, 64>}]} {
    %c0 = arith.constant 0 : index
    %c0_0 = arith.constant 0 : index
    %0 = vector.load %arg1[%c0, %c0_0] : memref<8x1xi32, #tpu.memory_space<vmem>>, vector<8x1xi32>
    %1 = tpu.iota {dimensions = array<i32: 1>} : vector<8x16xi32>
    %2 = vector.broadcast %0 : vector<8x1xi32> to vector<8x16xi32>
    %3 = arith.cmpi eq, %2, %1 : vector<8x16xi32>
    %4 = arith.extui %3 : vector<8x16xi1> to vector<8x16xi32>
    %5 = arith.sitofp %4 : vector<8x16xi32> to vector<8x16xf32>
    %c0_1 = arith.constant 0 : index
    %c0_2 = arith.constant 0 : index
    %6 = vector.load %arg2[%c0_1, %c0_2] : memref<8x32xf32, #tpu.memory_space<vmem>>, vector<8x32xf32>
    %c0_3 = arith.constant 0 : index
    %c0_4 = arith.constant 0 : index
    %7 = vector.load %arg3[%c0_3, %c0_4] : memref<32x64xf32, #tpu.memory_space<vmem>>, vector<32x64xf32>
    %cst = arith.constant dense<0.000000e+00> : vector<8x64xf32>
    %8 = tpu.matmul %6, %7, %cst {dimension_numbers = #tpu.dot_dimension_numbers<[1], [0], [0], [1], [0, 0, 1, 1], [], []>} : vector<8x32xf32>, vector<32x64xf32>, vector<8x64xf32> -> vector<8x64xf32>
    %c0_5 = arith.constant 0 : index
    %c0_6 = arith.constant 0 : index
    %9 = vector.load %arg4[%c0_5, %c0_6] : memref<16x64xf32, #tpu.memory_space<vmem>>, vector<16x64xf32>
    %cst_7 = arith.constant dense<0.000000e+00> : vector<8x64xf32>
    %10 = tpu.matmul %5, %9, %cst_7 {dimension_numbers = #tpu.dot_dimension_numbers<[1], [0], [0], [1], [0, 0, 1, 1], [], []>} : vector<8x16xf32>, vector<16x64xf32>, vector<8x64xf32> -> vector<8x64xf32>
    %11 = arith.addf %8, %10 : vector<8x64xf32>
    %cst_8 = arith.constant 0.000000e+00 : f32
    %12 = vector.broadcast %cst_8 : f32 to vector<8x64xf32>
    %13 = arith.maximumf %11, %12 : vector<8x64xf32>
    %cst_9 = arith.constant dense<0xFF800000> : vector<8xf32>
    %14 = vector.multi_reduction <maximumf>, %13, %cst_9 [1] : vector<8x64xf32> to vector<8xf32>
    %15 = vector.shape_cast %14 : vector<8xf32> to vector<8x1xf32>
    %16 = vector.broadcast %15 : vector<8x1xf32> to vector<8x64xf32>
    %17 = arith.subf %13, %16 : vector<8x64xf32>
    %18 = math.exp %17 : vector<8x64xf32>
    %cst_10 = arith.constant dense<0.000000e+00> : vector<8xf32>
    %19 = vector.multi_reduction <add>, %18, %cst_10 [1] : vector<8x64xf32> to vector<8xf32>
    %20 = vector.shape_cast %19 : vector<8xf32> to vector<8x1xf32>
    %21 = vector.broadcast %20 : vector<8x1xf32> to vector<8x64xf32>
    %22 = arith.divf %18, %21 : vector<8x64xf32>
    %c0_11 = arith.constant 0 : index
    %c0_12 = arith.constant 0 : index
    %23 = vector.load %arg5[%c0_11, %c0_12] : memref<8x64xf32, #tpu.memory_space<vmem>>, vector<8x64xf32>
    tpu.vector_store %arg5[%c0_11, %c0_12], %22 {strides = array<i32>} : memref<8x64xf32, #tpu.memory_space<vmem>>, vector<8x64xf32>,
    return
  }
  func.func @transform_0(%arg0: i32) -> (i32, i32) {
    %c0_i32 = arith.constant 0 : i32
    %c0_i32_0 = arith.constant 0 : i32
    return %arg0, %c0_i32 : i32, i32
  }
  func.func @transform_1(%arg0: i32) -> (i32, i32) {
    %c0_i32 = arith.constant 0 : i32
    %c0_i32_0 = arith.constant 0 : i32
    return %arg0, %c0_i32 : i32, i32
  }
  func.func @transform_2(%arg0: i32) -> (i32, i32) {
    %c0_i32 = arith.constant 0 : i32
    %c0_i32_0 = arith.constant 0 : i32
    %c0_i32_1 = arith.constant 0 : i32
    return %c0_i32, %c0_i32_0 : i32, i32
  }
  func.func @transform_3(%arg0: i32) -> (i32, i32) {
    %c0_i32 = arith.constant 0 : i32
    %c0_i32_0 = arith.constant 0 : i32
    %c0_i32_1 = arith.constant 0 : i32
    return %c0_i32, %c0_i32_0 : i32, i32
  }
  func.func @transform_4(%arg0: i32) -> (i32, i32) {
    %c0_i32 = arith.constant 0 : i32
    %c0_i32_0 = arith.constant 0 : i32
    return %arg0, %c0_i32 : i32, i32
  }
}

</mosaic_0001>

<bundles_post_ra>
// kernel: tpu_custom_call.1
= control target key start
LH: loop header
LB: loop body
LE: loop exit
PB: predicated region body
PF: predicated region fallthrough
CT: control target
= control target key end

     0   :  { %9 = vsyncpa [#allocation3], 0  ;;  %s452_s0 = inlined_call_operand.vmem [shape: s32[8,1], index: 0, kind: input, shape index: {}]   ;;  %s453_s1 = inlined_call_operand.hbm [shape: f32[8,32], index: 1, kind: input, shape index: {}]   ;;  %s454_s2 = inlined_call_operand.hbm [shape: f32[32,64], index: 2, kind: input, shape index: {}]   ;;  %s455_s3 = inlined_call_operand.vmem [shape: f32[16,64], index: 3, kind: input, shape index: {}]   ;;  %s456_s4 = inlined_call_operand.hbm [shape: f32[8,64], index: 4, kind: output, shape index: {}]  }
   0x1   :  { %10 = vsyncpa [#allocation6], 0 }
   0x2   :  { %11 = vsyncpa [#allocation4], 0  ;;  %s363_s15 = smov [#allocation2]   ;;  %s364_s17 = smov [#allocation5]  }
   0x3   :  { %s20_s16 = sshll.u32 %s363_s15, 4  ;;  %s29_s18 = sshll.u32 %s364_s17, 4  ;;  %s21_s16 = int_to_ptr.vmem [resolvable:$true] %s20_s16  ;;  %s397_s18 = int_to_ptr.vmem [resolvable:$true] %s29_s18 }
   0x4   :  { %s291_s21 = scalar_lea.hbm %s453_s1, 128 }
   0x5   :  { %p292_p0 = scmp.ne.s32.totalorder %s453_s1, %s291_s21  ;;  %p295_p1 = scmp.lt.u32.totalorder %s291_s21, %s453_s1 }
   0x7   :  { %p297_p2 = pnand %p295_p1, %p292_p0 }
   0x9   :  { %300 = shalt.err (!%p297_p2)
}
   0xa   :  { %s301_s26 = scalar_lea.vmem %s21_s16, 128  ;;  %p306_p4 = scmp.lt.s32.totalorder %s21_s16, %s21_s16 }
   0xb   :  { %p302_p3 = scmp.ne.s32.totalorder %s21_s16, %s301_s26  ;;  %p307_p5 = scmp.lt.s32.totalorder %s301_s26, %s301_s26 }
   0xd   :  { %p308_p6 = por %p307_p5, %p306_p4 }
   0xf   :  { %p309_p7 = pnand %p308_p6, %p302_p3 }
  0x11   :  { %312 = shalt.err (!%p309_p7)
}
  0x12   :  { %23 = dma.hbm_to_vmem [thread:$0]  %s453_s1, 128, %s21_s16, [#allocation3]  }
  0x13   :  { %s313_s5 = scalar_lea.hbm %s454_s2, 512 }
  0x14   :  { %p314_p8 = scmp.ne.s32.totalorder %s454_s2, %s313_s5  ;;  %p317_p9 = scmp.lt.u32.totalorder %s313_s5, %s454_s2 }
  0x16   :  { %p319_p10 = pnand %p317_p9, %p314_p8 }
  0x18   :  { %322 = shalt.err (!%p319_p10)
}
  0x19   :  { %s323_s10 = scalar_lea.vmem %s397_s18, 512  ;;  %p328_p12 = scmp.lt.s32.totalorder %s397_s18, %s397_s18 }
  0x1a   :  { %p324_p11 = scmp.ne.s32.totalorder %s397_s18, %s323_s10  ;;  %p329_p13 = scmp.lt.s32.totalorder %s323_s10, %s323_s10 }
  0x1c   :  { %p330_p0 = por %p329_p13, %p328_p12 }
  0x1e   :  { %p331_p1 = pnand %p330_p0, %p324_p11 }
  0x20   :  { %334 = shalt.err (!%p331_p1)
}
  0x21   :  { %s365_s1 = smov 128   ;;  %s366_s11 = smov 8  }
  0x22   :  { %35 = dma.hbm_to_vmem [thread:$0]  %s454_s2, 512, %s397_s18, [#allocation6], %s365_s1, %s365_s1, %s366_s11  }
  0x23   :  { %357 = dma.done.wait [#allocation3], 128  }
  0x24   :  { %358 = vsyncadd [#allocation3], 4294967168 }
  0x25   :  { %359 = dma.done.wait [#allocation6], 512  }
  0x26   :  { %360 = vsyncadd [#allocation6], 4294966784  ;;  %v367_v0 = vmov 0   ;;  %v368_v1 = vmov 0.0|0.0   ;;  %v44_v2 = vld [vmem:[%s452_s0] sm:$0xff]  ;;  %v55_v4 = vld [vmem:[#allocation5 + $0x8] sm:$0xff]  ;;  %v45_v14 = vlaneseq }
  0x27   :  { %286 = vset.pattern.permute.xlu0 %v367_v0  ;;  %270 = vmatprep.subr.bf16.mxu0 %v368_v1  ;;  %v54_v3 = vld [vmem:[#allocation5] sm:$0xff]  ;;  %v56_v6 = vld [vmem:[#allocation5 + $0x10] sm:$0xff]  ;;  %v57_v7 = vld [vmem:[#allocation5 + $0x18] sm:$0xff]  ;;  %vm369_vm0 = vmmov 0   ;;  %v370_v9 = vmov 0.0   ;;  %vm134_vm1 = vcmask 261120  }
  0x28   :  { %267 = vmatprep.subr.bf16.mxu1 %v368_v1  ;;  %48 = vperm.xlu0 %286, %v44_v2   ;;  %v271_v5 = vpack.c.bf16 %v55_v4, %v54_v3  ;;  %v58_v8 = vld [vmem:[%s455_s3] sm:$0xff]  ;;  %v59_v10 = vld [vmem:[%s455_s3 + $0x8] sm:$0xff]  ;;  %v274_v11 = vpack.c.bf16 %v57_v7, %v56_v6  ;;  %v53_v13 = vld [vmem:[#allocation2] sm:$0xff]  ;;  %v46_v15 = vand.u32 127, %v45_v14  ;;  %vm60_vm2 = vcmask 130048   ;;  %s371_s0 = smov [#allocation7]  }
  0x29   :  { %264 = vmatprep.mubr.msk.f32.mxu0 %vm369_vm0, %v370_v9  ;;  %253 = vmatprep.mubr.msk.f32.mxu1 %vm369_vm0, %v370_v9  ;;  %v268_v12 = vpack.c.bf16 %v59_v10, %v58_v8  ;;  %vm209_vm4 = vcmask 523264   ;;  %s228_s3 = sshll.u32 %s371_s0, 4  ;;  %s229_s3 = int_to_ptr.vmem [resolvable:$true] %s228_s3 }
  0x2a   :  { %272 = vmatpush3.bf16.msra.mxu0 %v271_v5  ;;  %s335_s19 = scalar_lea.vmem %s229_s3, 128  ;;  %p340_p3 = scmp.lt.s32.totalorder %s229_s3, %s229_s3 }
  0x2b   :  { %273 = vmatprep.subr.bf16.mxu0 %v368_v1  ;;  %269 = vmatpush3.bf16.msra.mxu1 %v268_v12  ;;  %p336_p2 = scmp.ne.s32.totalorder %s229_s3, %s335_s19  ;;  %p341_p4 = scmp.lt.s32.totalorder %s335_s19, %s335_s19 }
  0x2d   :  { %p342_p5 = por %p341_p4, %p340_p3 }
  0x2e   :  { %275 = vmatpush3.bf16.msra.mxu0 %v274_v11 }
  0x2f   :  { %p343_p6 = pnand %p342_p5, %p336_p2 }
  0x31   :  { %265 = vmatmul.mubr.msk.f32.vlgmr.msra.gmra.mrb[0].mxu0 %vm134_vm1, %v53_v13 }
  0xa7   :  { %v49_v16 = vpop.permute.xlu0 %48 }
  0xa8   :  { %vm50_vm3 = vcmp.eq.s32.totalorder %v49_v16, %v46_v15 }
  0xa9   :  { %v238_v17 = vsel %vm50_vm3, 1.0, %v370_v9 }
  0xaa   :  { %254 = vmatmul.mubr.msk.f32.vlgmr.msra.gmra.mrb[0].mxu1 %vm60_vm2, %v238_v17 }
 0x104   :  { %v204_v18 = vpop.f32.mrb[0].mxu0 }
 0x105   :  { %v266_v19 = vpop.f32.mrb[1].mxu0 }
 0x17d   :  { %v130_v20 = vpop.f32.mrb[0].mxu1 }
 0x17e   :  { %v205_v21 = vadd.f32 %v204_v18, %v130_v20  ;;  %v255_v22 = vpop.f32.mrb[1].mxu1 }
 0x180   :  { %v208_v23 = vmax.f32 %v205_v21, 0.0 }
 0x182   :  { %v210_v24 = vsel %vm209_vm4, %v208_v23, -inf }
 0x183   :  { %211 = vmax.xlane.f32.xlu0 %v210_v24 }
 0x210   :  { %v212_v25 = vpop.xlane.xlu0 %211 }
 0x211   :  { %v213_v26 = vsub.f32 %v208_v23, %v212_v25 }
 0x213   :  { %v214_v27 = vmul.f32 1.442695, %v213_v26 }
 0x215   :  { %287 = vpow2.f32 %v214_v27 }
 0x21f   :  { %v288_v28 = vpop.eup %287 }
 0x220   :  { %v216_v29 = vsel %vm209_vm4, %v288_v28, 0.0 }
 0x221   :  { %217 = vadd.xlane.f32.xlu1 %v216_v29 }
 0x2ae   :  { %v218_v30 = vpop.xlane.xlu1 %217 }
 0x2af   :  { %289 = vrcp.f32 %v218_v30 }
 0x2b9   :  { %v290_v31 = vpop.eup %289 }
 0x2ba   :  { %v220_v32 = vmul.f32 %v290_v31, %v288_v28 }
 0x2bc   :  { %221 = vst.msk [vmem:[#allocation7] sm:$0xff] %vm209_vm4, %v220_v32 }
 0x2bd   :  { %346 = shalt.err (!%p343_p6)
}
 0x2be   :  { %s347_s22 = scalar_lea.hbm %s456_s4, 128 }
 0x2bf   :  { %p348_p7 = scmp.ne.s32.totalorder %s456_s4, %s347_s22  ;;  %p351_p8 = scmp.lt.u32.totalorder %s347_s22, %s456_s4 }
 0x2c1   :  { %p353_p9 = pnand %p351_p8, %p348_p7 }
 0x2c3   :  { %356 = shalt.err (!%p353_p9)
}
 0x2c4   :  { %231 = dma.vmem_to_hbm [thread:$0]  %s229_s3, 128, %s456_s4, [#allocation4]  }
 0x2c5   :  { %361 = dma.done.wait [#allocation4], 128  }
 0x2c6   :  { %362 = vsyncadd [#allocation4], 4294967168 }
 0x2c7   :  { %235 = vsyncpa [#allocation3], 1 }
 0x2c8   :  { %236 = vsyncpa [#allocation6], 1 }
 0x2c9   :  { %237 = vsyncpa [#allocation4], 1 }

</bundles_post_ra>
